<compile_context>
chip_gen: v7x
topology: tpu7x:2x2x1
jax: 0.10.0
libtpu: 0.0.40
codegen_flags: <defaults>
</compile_context>

<pallas_src>
import jax
import jax.numpy as jnp
from jax.experimental import pallas as pl
from jax.experimental.pallas import tpu as pltpu


def _gate_kernel(gate_ref, x_ref, o_ref):
    # gate tile is (tr, 1) or (1, tc); VPU broadcast multiply across the tile.
    o_ref[...] = (gate_ref[...] * x_ref[...]).astype(o_ref.dtype)


def _choose_tiles(rows, cols, bytes_per_elem, block_budget_bytes):
    """Pick (tr, tc): widen the lane axis first, then rows; (8,128)-legal."""
    max_elems = max(block_budget_bytes // bytes_per_elem, 8 * 128)
    # Lane (column) axis first -> one contiguous HBM region per DMA.
    if cols * 8 <= max_elems:
        tc = cols                                    # full extent: always legal
    else:
        tc = (max_elems // 8) // 128 * 128           # multiple of 128
        tc = max(128, min(tc, (cols // 128) * 128))
    # Then grow the row axis.
    tr = (max_elems // tc) // 8 * 8                  # multiple of 8
    tr = max(tr, 8)
    if tr >= rows:
        tr = rows                                    # full extent: always legal
    return tr, tc


def gate_forward(x, gate, *, block_budget_bytes=8 * 1024 * 1024):
    """Pallas TPU forward of PyTorch `Gate`: out = gate * x (broadcast).

    x: (N, C, H, W); gate: (1, C, 1, 1).
    """
    N, C, H, W = x.shape
    hw = H * W
    out_dtype = jnp.result_type(x.dtype, gate.dtype)   # PyTorch type promotion

    if hw % 128 == 0:
        # Per-channel-row layout: lane-dense spatial axis, tiny gate column.
        rows, cols = N * C, hw
        x2d = x.reshape(rows, cols)
        gate2d = jnp.broadcast_to(gate.reshape(1, C), (N, C)).reshape(rows, 1)

        def gate_spec(tr, tc):
            return pl.BlockSpec((tr, 1), lambda i, j: (i, 0))
    else:
        # Per-sample-row layout: keeps stores lane-dense for any H*W with no
        # padding; gate row (1, C*H*W) is materialized once (tiny vs. x).
        rows, cols = N, C * hw
        x2d = x.reshape(rows, cols)
        gate2d = jnp.broadcast_to(gate.reshape(C, 1), (C, hw)).reshape(1, cols)

        def gate_spec(tr, tc):
            return pl.BlockSpec((1, tc), lambda i, j: (0, j))

    per_elem = jnp.dtype(x.dtype).itemsize + jnp.dtype(out_dtype).itemsize
    tr, tc = _choose_tiles(rows, cols, per_elem, block_budget_bytes)

    # Column axis innermost (fastest varying) so the gate tile index changes
    # least often between consecutive steps.
    grid = (pl.cdiv(rows, tr), pl.cdiv(cols, tc))

    bytes_accessed = (
        rows * cols * jnp.dtype(x.dtype).itemsize       # read x
        + rows * cols * jnp.dtype(out_dtype).itemsize   # write out
        + gate2d.size * jnp.dtype(gate.dtype).itemsize  # read gate
    )

    out2d = pl.pallas_call(
        _gate_kernel,
        out_shape=jax.ShapeDtypeStruct((rows, cols), out_dtype),
        grid_spec=pltpu.PrefetchScalarGridSpec(
            num_scalar_prefetch=0,
            grid=grid,
            in_specs=[
                gate_spec(tr, tc),                           # gate tile
                pl.BlockSpec((tr, tc), lambda i, j: (i, j)),  # x tile
            ],
            out_specs=pl.BlockSpec((tr, tc), lambda i, j: (i, j)),
        ),
        compiler_params=pltpu.CompilerParams(
            dimension_semantics=("parallel", "parallel"),
            # ~16 MiB double-buffered blocks need more than the v5e 16 MiB
            # scoped default; 32 MiB is within every generation's physical VMEM.
            vmem_limit_bytes=32 * 1024 * 1024,
        ),
        cost_estimate=pl.CostEstimate(
            flops=rows * cols,
            transcendentals=0,
            bytes_accessed=bytes_accessed,
        ),
    )(gate2d, x2d)

    return out2d.reshape(N, C, H, W)


if __name__ == "__main__":
    key = jax.random.PRNGKey(0)
    k0, k1, k2 = jax.random.split(key, 3)

    # Primary case (matches the module's intended use): Gate(out_planes=4),
    # gate initialized to ones exactly like nn.Parameter(torch.ones(1,C,1,1)).
    N, C, H, W = 2, 4, 16, 16
    x = jax.random.normal(k0, (N, C, H, W), dtype=jnp.float32)
    gate = jnp.ones((1, C, 1, 1), dtype=jnp.float32)
    out = jax.block_until_ready(gate_forward(x, gate))
    ref = gate * x
    assert out.shape == ref.shape and out.dtype == ref.dtype
    assert jnp.allclose(out, ref, atol=1e-6, rtol=1e-6)

    # Misaligned-spatial case (H*W = 49, not a multiple of 128) exercises the
    # padding-free (N, C*H*W) layout; non-unit gate to verify the multiply.
    N2, C2, H2, W2 = 2, 3, 7, 7
    x2 = jax.random.normal(k1, (N2, C2, H2, W2), dtype=jnp.float32)
    gate2 = jax.random.normal(k2, (1, C2, 1, 1), dtype=jnp.float32)
    out2 = jax.block_until_ready(gate_forward(x2, gate2))
    ref2 = gate2 * x2
    assert out2.shape == ref2.shape and out2.dtype == ref2.dtype
    assert jnp.allclose(out2, ref2, atol=1e-6, rtol=1e-6)

    print("KERNEL_OK")
</pallas_src>

<mosaic_0001>
module attributes {stable_mosaic.version = 11 : i64} {
  func.func @_gate_kernel(%arg0: i32, %arg1: i32, %arg2: memref<8x1xf32, #tpu.memory_space<vmem>>, %arg3: memref<8x256xf32, #tpu.memory_space<vmem>>, %arg4: memref<8x256xf32, #tpu.memory_space<vmem>>) attributes {dimension_semantics = [#tpu.dimension_semantics<parallel>, #tpu.dimension_semantics<parallel>], iteration_bounds = array<i64: 1, 1>, scalar_prefetch = 0 : i64, scratch_operands = 0 : i64, tpu.core_type = #tpu.core_type<tc>, window_params = [{transform_indices = @transform_0, window_bounds = array<i64: 8, 1>}, {transform_indices = @transform_1, window_bounds = array<i64: 8, 256>}, {transform_indices = @transform_2, window_bounds = array<i64: 8, 256>}]} {
    %c0 = arith.constant 0 : index
    %c0_0 = arith.constant 0 : index
    %0 = vector.load %arg2[%c0, %c0_0] : memref<8x1xf32, #tpu.memory_space<vmem>>, vector<8x1xf32>
    %c0_1 = arith.constant 0 : index
    %c0_2 = arith.constant 0 : index
    %1 = vector.load %arg3[%c0_1, %c0_2] : memref<8x256xf32, #tpu.memory_space<vmem>>, vector<8x256xf32>
    %2 = vector.broadcast %0 : vector<8x1xf32> to vector<8x256xf32>
    %3 = arith.mulf %2, %1 : vector<8x256xf32>
    %c0_3 = arith.constant 0 : index
    %c0_4 = arith.constant 0 : index
    %4 = vector.load %arg4[%c0_3, %c0_4] : memref<8x256xf32, #tpu.memory_space<vmem>>, vector<8x256xf32>
    tpu.vector_store %arg4[%c0_3, %c0_4], %3 {strides = array<i32>} : memref<8x256xf32, #tpu.memory_space<vmem>>, vector<8x256xf32>,
    return
  }
  func.func @transform_0(%arg0: i32, %arg1: i32) -> (i32, i32) {
    %c0_i32 = arith.constant 0 : i32
    %c0_i32_0 = arith.constant 0 : i32
    return %arg0, %c0_i32 : i32, i32
  }
  func.func @transform_1(%arg0: i32, %arg1: i32) -> (i32, i32) {
    %c0_i32 = arith.constant 0 : i32
    return %arg0, %arg1 : i32, i32
  }
  func.func @transform_2(%arg0: i32, %arg1: i32) -> (i32, i32) {
    %c0_i32 = arith.constant 0 : i32
    return %arg0, %arg1 : i32, i32
  }
}

</mosaic_0001>

<bundles_post_ra>
// kernel: tpu_custom_call.1
= control target key start
LH: loop header
LB: loop body
LE: loop exit
PB: predicated region body
PF: predicated region fallthrough
CT: control target
= control target key end

     0   :  { %7 = vsyncpa [#allocation3], 0  ;;  %s148_s0 = inlined_call_operand.vmem [shape: f32[8,1], index: 0, kind: input, shape index: {}]   ;;  %s149_s1 = inlined_call_operand.hbm [shape: f32[8,256], index: 1, kind: input, shape index: {}]   ;;  %s150_s2 = inlined_call_operand.hbm [shape: f32[8,256], index: 2, kind: output, shape index: {}]  }
   0x1   :  { %8 = vsyncpa [#allocation4], 0  ;;  %s103_s9 = smov [#allocation2]   ;;  %s55_s13 = scalar_lea.hbm %s149_s1, 256 }
   0x2   :  { %s17_s10 = sshll.u32 %s103_s9, 4  ;;  %p56_p0 = scmp.ne.s32.totalorder %s149_s1, %s55_s13  ;;  %s18_s10 = int_to_ptr.vmem [resolvable:$true] %s17_s10 }
   0x3   :  { %p59_p1 = scmp.lt.u32.totalorder %s55_s13, %s149_s1 }
   0x5   :  { %p61_p2 = pnand %p59_p1, %p56_p0 }
   0x7   :  { %64 = shalt.err (!%p61_p2)
}
   0x8   :  { %s65_s18 = scalar_lea.vmem %s18_s10, 256  ;;  %p70_p4 = scmp.lt.s32.totalorder %s18_s10, %s18_s10 }
   0x9   :  { %p66_p3 = scmp.ne.s32.totalorder %s18_s10, %s65_s18  ;;  %p71_p5 = scmp.lt.s32.totalorder %s65_s18, %s65_s18 }
   0xb   :  { %p72_p6 = por %p71_p5, %p70_p4 }
   0xd   :  { %p73_p7 = pnand %p72_p6, %p66_p3 }
   0xf   :  { %76 = shalt.err (!%p73_p7)
}
  0x10   :  { %20 = dma.hbm_to_vmem [thread:$0]  %s149_s1, 256, %s18_s10, [#allocation3]  }
  0x11   :  { %99 = dma.done.wait [#allocation3], 256  }
  0x12   :  { %100 = vsyncadd [#allocation3], 4294967040  ;;  %v104_v0 = vmov 0   ;;  %v24_v1 = vld [vmem:[%s148_s0] sm:$0xff]  ;;  %v26_v3 = vld [vmem:[#allocation2 + $0x8] sm:$0xff]  ;;  %s105_s23 = smov [#allocation5]  }
  0x13   :  { %54 = vset.pattern.permute.xlu0 %v104_v0  ;;  %v25_v2 = vld [vmem:[#allocation2] sm:$0xff]  ;;  %s42_s24 = sshll.u32 %s105_s23, 4  ;;  %s43_s24 = int_to_ptr.vmem [resolvable:$true] %s42_s24 }
  0x14   :  { %29 = vperm.xlu0 %54, %v24_v1   ;;  %s77_s1 = scalar_lea.vmem %s43_s24, 256  ;;  %p82_p9 = scmp.lt.s32.totalorder %s43_s24, %s43_s24 }
  0x15   :  { %p78_p8 = scmp.ne.s32.totalorder %s43_s24, %s77_s1  ;;  %p83_p10 = scmp.lt.s32.totalorder %s77_s1, %s77_s1 }
  0x17   :  { %p84_p11 = por %p83_p10, %p82_p9 }
  0x19   :  { %p85_p12 = pnand %p84_p11, %p78_p8 }
  0x93   :  { %v30_v4 = vpop.permute.xlu0 %29 }
  0x94   :  { %v32_v5 = vmul.f32 %v30_v4, %v25_v2  ;;  %v33_v6 = vmul.f32 %v30_v4, %v26_v3 }
  0x96   :  { %34 = vst [vmem:[#allocation5] sm:$0xff] %v32_v5  ;;  %35 = vst [vmem:[#allocation5 + $0x8] sm:$0xff] %v33_v6 }
  0x97   :  { %88 = shalt.err (!%p85_p12)
}
  0x98   :  { %s89_s26 = scalar_lea.hbm %s150_s2, 256 }
  0x99   :  { %p90_p13 = scmp.ne.s32.totalorder %s150_s2, %s89_s26  ;;  %p93_p0 = scmp.lt.u32.totalorder %s89_s26, %s150_s2 }
  0x9b   :  { %p95_p1 = pnand %p93_p0, %p90_p13 }
  0x9d   :  { %98 = shalt.err (!%p95_p1)
}
  0x9e   :  { %45 = dma.vmem_to_hbm [thread:$0]  %s43_s24, 256, %s150_s2, [#allocation4]  }
  0x9f   :  { %101 = dma.done.wait [#allocation4], 256  }
  0xa0   :  { %102 = vsyncadd [#allocation4], 4294967040 }
  0xa1   :  { %49 = vsyncpa [#allocation3], 1 }
  0xa2   :  { %50 = vsyncpa [#allocation4], 1 }

</bundles_post_ra>
